<compile_context>
chip_gen: v5e
topology: v5e:2x2
jax: 0.10.0
libtpu: 0.0.40
codegen_flags: <defaults>
</compile_context>

<pallas_src>
import functools

import jax
import jax.numpy as jnp
from jax.experimental import pallas as pl
from jax.experimental.pallas import tpu as pltpu

LEAKY_SLOPE = 0.2
LANES = 128      # vreg lane width (all TPU generations)
SUBLANES = 8     # vreg sublane height (f32)


def _round_up(x, m):
    return ((x + m - 1) // m) * m


def _rgn_mlp_kernel(num_linear, use_bf16_matmul, z_ref, *refs):
    """Fused MLP: (Linear + LeakyReLU) * num_layers, final Linear + Tanh.

    refs = (w0, b0, w1, b1, ..., w_{L-1}, b_{L-1}, out_ref)
    All operands are lane-dense (feature dims padded to 128) VMEM tiles; the
    whole forward pass stays resident in VMEM/vregs.
    """
    out_ref = refs[-1]
    params = refs[:-1]
    assert len(params) == 2 * num_linear

    h = z_ref[...]
    if h.dtype != jnp.float32:
        h = h.astype(jnp.float32)

    for i in range(num_linear):
        w = params[2 * i][...]          # [in_pad, out_pad]
        b = params[2 * i + 1][...]      # [1, out_pad]
        if use_bf16_matmul:
            # bf16-native MXU on v6e/v7x; f32 accumulate. Bias/act stay f32.
            acc = jnp.dot(h.astype(jnp.bfloat16), w.astype(jnp.bfloat16),
                          preferred_element_type=jnp.float32)
        else:
            if w.dtype != jnp.float32:
                w = w.astype(jnp.float32)
            acc = jnp.dot(h, w, preferred_element_type=jnp.float32)
        h = acc + b.astype(jnp.float32)
        if i < num_linear - 1:
            # latent activation: LeakyReLU(0.2) (VPU select)
            h = jnp.where(h > 0, h, LEAKY_SLOPE * h)
        else:
            # final Tanh (EUP)
            h = jnp.tanh(h)

    out_ref[...] = h.astype(out_ref.dtype)


def rgn_res_function(z, weights, biases, *, block_b=None, use_bf16_matmul=False):
    """Apply the RGN dynamics MLP to z of shape [B, latent_dim].

    weights: list of [in, out] arrays (== PyTorch W.T), biases: list of [out].
    Handles arbitrary B (ragged batches are zero-padded, result is sliced).
    """
    B, latent_dim = z.shape
    num_linear = len(weights)
    assert len(biases) == num_linear
    assert weights[0].shape[0] == latent_dim
    assert weights[-1].shape[1] == latent_dim

    # Feature dims padded to 128 lanes (lane-dense matmuls + unmasked stores).
    dims = [latent_dim] + [w.shape[1] for w in weights]
    pdims = [_round_up(d, LANES) for d in dims]

    params = []
    for li, (w, b) in enumerate(zip(weights, biases)):
        pin, pout = pdims[li], pdims[li + 1]
        wp = jnp.zeros((pin, pout), w.dtype).at[: w.shape[0], : w.shape[1]].set(w)
        bp = jnp.zeros((1, pout), b.dtype).at[0, : b.shape[0]].set(b)
        params.append(wp)
        params.append(bp)

    # Batch blocking: big sublane-aligned tiles; grid splits across TCs (v7x)
    # once the (fused) batch exceeds one block.
    if block_b is None:
        block_b = min(_round_up(max(B, 1), SUBLANES), 512)
    block_b = max(SUBLANES, _round_up(block_b, SUBLANES))
    grid_b = pl.cdiv(max(B, 1), block_b)
    b_pad = grid_b * block_b

    z_p = jnp.zeros((b_pad, pdims[0]), z.dtype).at[:B, :latent_dim].set(z)

    in_specs = [pl.BlockSpec((block_b, pdims[0]), lambda i: (i, 0))]
    for li in range(num_linear):
        wp = params[2 * li]
        bp = params[2 * li + 1]
        # Grid-invariant weights/biases: constant index_map -> loaded once,
        # stay VMEM-resident across the batch grid.
        in_specs.append(pl.BlockSpec(wp.shape, lambda i: (0, 0)))
        in_specs.append(pl.BlockSpec(bp.shape, lambda i: (0, 0)))

    kernel = functools.partial(_rgn_mlp_kernel, num_linear, use_bf16_matmul)

    out_p = pl.pallas_call(
        kernel,
        out_shape=jax.ShapeDtypeStruct((b_pad, pdims[-1]), z.dtype),
        grid_spec=pltpu.PrefetchScalarGridSpec(
            num_scalar_prefetch=0,
            grid=(grid_b,),
            in_specs=in_specs,
            out_specs=pl.BlockSpec((block_b, pdims[-1]), lambda i: (i, 0)),
        ),
        compiler_params=pltpu.CompilerParams(
            dimension_semantics=("parallel",),
            # Explicit budget so the same block sizing holds on v7x (64 MiB
            # physical / 32 MiB scoped default) as well as v5e/v6e.
            vmem_limit_bytes=64 * 1024 * 1024,
        ),
    )(z_p, *params)

    return out_p[:B, :latent_dim]


def init_params(key, latent_dim, num_hidden, num_layers):
    """Deterministic init of the (num_layers + 1) Linear layers."""
    dims = [latent_dim] + [num_hidden] * num_layers + [latent_dim]
    weights, biases = [], []
    for i in range(len(dims) - 1):
        key, kw, kb = jax.random.split(key, 3)
        fan_in = dims[i]
        bound = 1.0 / jnp.sqrt(fan_in)
        w = jax.random.uniform(kw, (dims[i], dims[i + 1]),
                               minval=-bound, maxval=bound, dtype=jnp.float32)
        b = jax.random.uniform(kb, (dims[i + 1],),
                               minval=-bound, maxval=bound, dtype=jnp.float32)
        weights.append(w)
        biases.append(b)
    return weights, biases


def reference_forward(z, weights, biases):
    """Pure-JAX reference of the same MLP (for correctness check)."""
    h = z
    n = len(weights)
    for i, (w, b) in enumerate(zip(weights, biases)):
        h = h @ w + b
        if i < n - 1:
            h = jnp.where(h > 0, h, LEAKY_SLOPE * h)
        else:
            h = jnp.tanh(h)
    return h


if __name__ == "__main__":
    # cfg: latent_dim=32, num_hidden=64, num_layers=3 -> 4 linear layers total
    latent_dim, num_hidden, num_layers = 32, 64, 3

    key = jax.random.PRNGKey(0)
    key, kparams = jax.random.split(key)
    weights, biases = init_params(kparams, latent_dim, num_hidden, num_layers)

    # t is ignored by the forward pass (odeint wrapper), matching PyTorch.
    t = jnp.float32(0.0)
    del t

    # batch=8: the cfg-scale case; batch=200: exercises the ragged-batch /
    # sublane-padding path (both are tiny and fast).
    for batch in (8, 200):
        key, kz = jax.random.split(key)
        z = jax.random.normal(kz, (batch, latent_dim), dtype=jnp.float32)

        out = jax.block_until_ready(rgn_res_function(z, weights, biases))
        ref = reference_forward(z, weights, biases)

        assert out.shape == (batch, latent_dim)
        assert jnp.allclose(out, ref, atol=1e-5, rtol=1e-5), \
            f"mismatch vs reference at batch={batch}"

    print("KERNEL_OK")
</pallas_src>

<mosaic_0001>
module attributes {stable_mosaic.version = 11 : i64} {
  func.func @_rgn_mlp_kernel(%arg0: i32, %arg1: memref<8x128xf32, #tpu.memory_space<vmem>>, %arg2: memref<128x128xf32, #tpu.memory_space<vmem>>, %arg3: memref<1x128xf32, #tpu.memory_space<vmem>>, %arg4: memref<128x128xf32, #tpu.memory_space<vmem>>, %arg5: memref<1x128xf32, #tpu.memory_space<vmem>>, %arg6: memref<128x128xf32, #tpu.memory_space<vmem>>, %arg7: memref<1x128xf32, #tpu.memory_space<vmem>>, %arg8: memref<128x128xf32, #tpu.memory_space<vmem>>, %arg9: memref<1x128xf32, #tpu.memory_space<vmem>>, %arg10: memref<8x128xf32, #tpu.memory_space<vmem>>) attributes {dimension_semantics = [#tpu.dimension_semantics<parallel>], iteration_bounds = array<i64: 1>, scalar_prefetch = 0 : i64, scratch_operands = 0 : i64, tpu.core_type = #tpu.core_type<tc>, window_params = [{transform_indices = @transform_0, window_bounds = array<i64: 8, 128>}, {pipeline_mode = #tpu.pipeline_mode<synchronous>, transform_indices = @transform_1, window_bounds = array<i64: 128, 128>}, {pipeline_mode = #tpu.pipeline_mode<synchronous>, transform_indices = @transform_2, window_bounds = array<i64: 1, 128>}, {pipeline_mode = #tpu.pipeline_mode<synchronous>, transform_indices = @transform_3, window_bounds = array<i64: 128, 128>}, {pipeline_mode = #tpu.pipeline_mode<synchronous>, transform_indices = @transform_4, window_bounds = array<i64: 1, 128>}, {pipeline_mode = #tpu.pipeline_mode<synchronous>, transform_indices = @transform_5, window_bounds = array<i64: 128, 128>}, {pipeline_mode = #tpu.pipeline_mode<synchronous>, transform_indices = @transform_6, window_bounds = array<i64: 1, 128>}, {pipeline_mode = #tpu.pipeline_mode<synchronous>, transform_indices = @transform_7, window_bounds = array<i64: 128, 128>}, {pipeline_mode = #tpu.pipeline_mode<synchronous>, transform_indices = @transform_8, window_bounds = array<i64: 1, 128>}, {transform_indices = @transform_9, window_bounds = array<i64: 8, 128>}]} {
    %c0 = arith.constant 0 : index
    %c0_0 = arith.constant 0 : index
    %0 = vector.load %arg1[%c0, %c0_0] : memref<8x128xf32, #tpu.memory_space<vmem>>, vector<8x128xf32>
    %c0_1 = arith.constant 0 : index
    %c0_2 = arith.constant 0 : index
    %1 = vector.load %arg2[%c0_1, %c0_2] : memref<128x128xf32, #tpu.memory_space<vmem>>, vector<128x128xf32>
    %c0_3 = arith.constant 0 : index
    %c0_4 = arith.constant 0 : index
    %2 = vector.load %arg3[%c0_3, %c0_4] : memref<1x128xf32, #tpu.memory_space<vmem>>, vector<1x128xf32>
    %cst = arith.constant dense<0.000000e+00> : vector<8x128xf32>
    %3 = tpu.matmul %0, %1, %cst {dimension_numbers = #tpu.dot_dimension_numbers<[1], [0], [0], [1], [0, 0, 1, 1], [], []>} : vector<8x128xf32>, vector<128x128xf32>, vector<8x128xf32> -> vector<8x128xf32>
    %4 = vector.broadcast %2 : vector<1x128xf32> to vector<8x128xf32>
    %5 = arith.addf %3, %4 : vector<8x128xf32>
    %cst_5 = arith.constant 0.000000e+00 : f32
    %6 = vector.broadcast %cst_5 : f32 to vector<8x128xf32>
    %7 = arith.cmpf ogt, %5, %6 : vector<8x128xf32>
    %cst_6 = arith.constant 2.000000e-01 : f32
    %8 = vector.broadcast %cst_6 : f32 to vector<8x128xf32>
    %9 = arith.mulf %8, %5 : vector<8x128xf32>
    %10 = arith.select %7, %5, %9 : vector<8x128xi1>, vector<8x128xf32>
    %c0_7 = arith.constant 0 : index
    %c0_8 = arith.constant 0 : index
    %11 = vector.load %arg4[%c0_7, %c0_8] : memref<128x128xf32, #tpu.memory_space<vmem>>, vector<128x128xf32>
    %c0_9 = arith.constant 0 : index
    %c0_10 = arith.constant 0 : index
    %12 = vector.load %arg5[%c0_9, %c0_10] : memref<1x128xf32, #tpu.memory_space<vmem>>, vector<1x128xf32>
    %cst_11 = arith.constant dense<0.000000e+00> : vector<8x128xf32>
    %13 = tpu.matmul %10, %11, %cst_11 {dimension_numbers = #tpu.dot_dimension_numbers<[1], [0], [0], [1], [0, 0, 1, 1], [], []>} : vector<8x128xf32>, vector<128x128xf32>, vector<8x128xf32> -> vector<8x128xf32>
    %14 = vector.broadcast %12 : vector<1x128xf32> to vector<8x128xf32>
    %15 = arith.addf %13, %14 : vector<8x128xf32>
    %cst_12 = arith.constant 0.000000e+00 : f32
    %16 = vector.broadcast %cst_12 : f32 to vector<8x128xf32>
    %17 = arith.cmpf ogt, %15, %16 : vector<8x128xf32>
    %cst_13 = arith.constant 2.000000e-01 : f32
    %18 = vector.broadcast %cst_13 : f32 to vector<8x128xf32>
    %19 = arith.mulf %18, %15 : vector<8x128xf32>
    %20 = arith.select %17, %15, %19 : vector<8x128xi1>, vector<8x128xf32>
    %c0_14 = arith.constant 0 : index
    %c0_15 = arith.constant 0 : index
    %21 = vector.load %arg6[%c0_14, %c0_15] : memref<128x128xf32, #tpu.memory_space<vmem>>, vector<128x128xf32>
    %c0_16 = arith.constant 0 : index
    %c0_17 = arith.constant 0 : index
    %22 = vector.load %arg7[%c0_16, %c0_17] : memref<1x128xf32, #tpu.memory_space<vmem>>, vector<1x128xf32>
    %cst_18 = arith.constant dense<0.000000e+00> : vector<8x128xf32>
    %23 = tpu.matmul %20, %21, %cst_18 {dimension_numbers = #tpu.dot_dimension_numbers<[1], [0], [0], [1], [0, 0, 1, 1], [], []>} : vector<8x128xf32>, vector<128x128xf32>, vector<8x128xf32> -> vector<8x128xf32>
    %24 = vector.broadcast %22 : vector<1x128xf32> to vector<8x128xf32>
    %25 = arith.addf %23, %24 : vector<8x128xf32>
    %cst_19 = arith.constant 0.000000e+00 : f32
    %26 = vector.broadcast %cst_19 : f32 to vector<8x128xf32>
    %27 = arith.cmpf ogt, %25, %26 : vector<8x128xf32>
    %cst_20 = arith.constant 2.000000e-01 : f32
    %28 = vector.broadcast %cst_20 : f32 to vector<8x128xf32>
    %29 = arith.mulf %28, %25 : vector<8x128xf32>
    %30 = arith.select %27, %25, %29 : vector<8x128xi1>, vector<8x128xf32>
    %c0_21 = arith.constant 0 : index
    %c0_22 = arith.constant 0 : index
    %31 = vector.load %arg8[%c0_21, %c0_22] : memref<128x128xf32, #tpu.memory_space<vmem>>, vector<128x128xf32>
    %c0_23 = arith.constant 0 : index
    %c0_24 = arith.constant 0 : index
    %32 = vector.load %arg9[%c0_23, %c0_24] : memref<1x128xf32, #tpu.memory_space<vmem>>, vector<1x128xf32>
    %cst_25 = arith.constant dense<0.000000e+00> : vector<8x128xf32>
    %33 = tpu.matmul %30, %31, %cst_25 {dimension_numbers = #tpu.dot_dimension_numbers<[1], [0], [0], [1], [0, 0, 1, 1], [], []>} : vector<8x128xf32>, vector<128x128xf32>, vector<8x128xf32> -> vector<8x128xf32>
    %34 = vector.broadcast %32 : vector<1x128xf32> to vector<8x128xf32>
    %35 = arith.addf %33, %34 : vector<8x128xf32>
    %36 = math.tanh %35 : vector<8x128xf32>
    %c0_26 = arith.constant 0 : index
    %c0_27 = arith.constant 0 : index
    %37 = vector.load %arg10[%c0_26, %c0_27] : memref<8x128xf32, #tpu.memory_space<vmem>>, vector<8x128xf32>
    tpu.vector_store %arg10[%c0_26, %c0_27], %36 {strides = array<i32>} : memref<8x128xf32, #tpu.memory_space<vmem>>, vector<8x128xf32>,
    return
  }
  func.func @transform_0(%arg0: i32) -> (i32, i32) {
    %c0_i32 = arith.constant 0 : i32
    %c0_i32_0 = arith.constant 0 : i32
    return %arg0, %c0_i32 : i32, i32
  }
  func.func @transform_1(%arg0: i32) -> (i32, i32) {
    %c0_i32 = arith.constant 0 : i32
    %c0_i32_0 = arith.constant 0 : i32
    %c0_i32_1 = arith.constant 0 : i32
    return %c0_i32, %c0_i32_0 : i32, i32
  }
  func.func @transform_2(%arg0: i32) -> (i32, i32) {
    %c0_i32 = arith.constant 0 : i32
    %c0_i32_0 = arith.constant 0 : i32
    %c0_i32_1 = arith.constant 0 : i32
    return %c0_i32, %c0_i32_0 : i32, i32
  }
  func.func @transform_3(%arg0: i32) -> (i32, i32) {
    %c0_i32 = arith.constant 0 : i32
    %c0_i32_0 = arith.constant 0 : i32
    %c0_i32_1 = arith.constant 0 : i32
    return %c0_i32, %c0_i32_0 : i32, i32
  }
  func.func @transform_4(%arg0: i32) -> (i32, i32) {
    %c0_i32 = arith.constant 0 : i32
    %c0_i32_0 = arith.constant 0 : i32
    %c0_i32_1 = arith.constant 0 : i32
    return %c0_i32, %c0_i32_0 : i32, i32
  }
  func.func @transform_5(%arg0: i32) -> (i32, i32) {
    %c0_i32 = arith.constant 0 : i32
    %c0_i32_0 = arith.constant 0 : i32
    %c0_i32_1 = arith.constant 0 : i32
    return %c0_i32, %c0_i32_0 : i32, i32
  }
  func.func @transform_6(%arg0: i32) -> (i32, i32) {
    %c0_i32 = arith.constant 0 : i32
    %c0_i32_0 = arith.constant 0 : i32
    %c0_i32_1 = arith.constant 0 : i32
    return %c0_i32, %c0_i32_0 : i32, i32
  }
  func.func @transform_7(%arg0: i32) -> (i32, i32) {
    %c0_i32 = arith.constant 0 : i32
    %c0_i32_0 = arith.constant 0 : i32
    %c0_i32_1 = arith.constant 0 : i32
    return %c0_i32, %c0_i32_0 : i32, i32
  }
  func.func @transform_8(%arg0: i32) -> (i32, i32) {
    %c0_i32 = arith.constant 0 : i32
    %c0_i32_0 = arith.constant 0 : i32
    %c0_i32_1 = arith.constant 0 : i32
    return %c0_i32, %c0_i32_0 : i32, i32
  }
  func.func @transform_9(%arg0: i32) -> (i32, i32) {
    %c0_i32 = arith.constant 0 : i32
    %c0_i32_0 = arith.constant 0 : i32
    return %arg0, %c0_i32 : i32, i32
  }
}

</mosaic_0001>

<bundles_post_ra>
// kernel: tpu_custom_call.1
= control target key start
LH: loop header
LB: loop body
LE: loop exit
PB: predicated region body
PF: predicated region fallthrough
CT: control target
= control target key end

     0   :  { %14 = vsyncpa [#allocation3], 0  ;;  %s554_s0 = inlined_call_operand.hbm [shape: f32[8,128], index: 0, kind: input, shape index: {}]   ;;  %s555_s1 = inlined_call_operand.hbm [shape: f32[128,128], index: 1, kind: input, shape index: {}]   ;;  %s556_s2 = inlined_call_operand.vmem [shape: f32[1,128], index: 2, kind: input, shape index: {}]   ;;  %s557_s3 = inlined_call_operand.hbm [shape: f32[128,128], index: 3, kind: input, shape index: {}]   ;;  %s558_s4 = inlined_call_operand.vmem [shape: f32[1,128], index: 4, kind: input, shape index: {}]   ;;  %s559_s5 = inlined_call_operand.hbm [shape: f32[128,128], index: 5, kind: input, shape index: {}]   ;;  %s560_s6 = inlined_call_operand.vmem [shape: f32[1,128], index: 6, kind: input, shape index: {}]   ;;  %s561_s7 = inlined_call_operand.hbm [shape: f32[128,128], index: 7, kind: input, shape index: {}]   ;;  %s562_s8 = inlined_call_operand.vmem [shape: f32[1,128], index: 8, kind: input, shape index: {}]   ;;  %s563_s9 = inlined_call_operand.hbm [shape: f32[8,128], index: 9, kind: output, shape index: {}]  }
   0x1   :  { %15 = vsyncpa [#allocation6], 0 }
   0x2   :  { %16 = vsyncpa [#allocation9], 0  ;;  %s33_s11 = sshll.u32 %s555_s1, 4  ;;  %s34_s11 = int_to_ptr.hbm [resolvable:$true] %s33_s11 }
   0x3   :  { %17 = vsyncpa [#allocation4], 0  ;;  %s466_s12 = smov [#allocation5]   ;;  %s63_s16 = sshll.u32 %s559_s5, 4  ;;  %s64_s16 = int_to_ptr.hbm [resolvable:$true] %s63_s16 }
   0x4   :  { %s35_s13 = sshll.u32 %s466_s12, 4  ;;  %s467_s17 = smov 128   ;;  %s36_s13 = int_to_ptr.vmem [resolvable:$true] %s35_s13 }
   0x5   :  { %s468_s18 = smov 8   ;;  %s469_s19 = smov [#allocation8]  }
   0x6   :  { %41 = dma.hbm_to_vmem [thread:$0]  %s34_s11, 2048, %s36_s13, [#allocation6], %s467_s17, %s467_s17, %s468_s18  }
   0x7   :  { %s65_s20 = sshll.u32 %s469_s19, 4  ;;  %s23_s23 = sshll.u32 %s554_s0, 4  ;;  %s66_s20 = int_to_ptr.vmem [resolvable:$true] %s65_s20  ;;  %s24_s23 = int_to_ptr.hbm [resolvable:$true] %s23_s23 }
   0x8   :  { %71 = dma.hbm_to_vmem [thread:$0]  %s64_s16, 2048, %s66_s20, [#allocation9], %s467_s17, %s467_s17, %s468_s18  }
   0x9   :  { %s48_s25 = sshll.u32 %s557_s3, 4  ;;  %s470_s26 = smov [#allocation2]   ;;  %s49_s25 = int_to_ptr.hbm [resolvable:$true] %s48_s25 }
   0xa   :  { %s25_s27 = sshll.u32 %s470_s26, 4  ;;  %s471_s5 = smov [#allocation7]   ;;  %s26_s27 = int_to_ptr.vmem [resolvable:$true] %s25_s27 }
   0xb   :  { %28 = dma.hbm_to_vmem [thread:$0]  %s24_s23, 128, %s26_s27, [#allocation3]  }
   0xc   :  { %s50_s28 = sshll.u32 %s471_s5, 4  ;;  %s78_s10 = sshll.u32 %s561_s7, 4  ;;  %s51_s28 = int_to_ptr.vmem [resolvable:$true] %s50_s28  ;;  %s79_s10 = int_to_ptr.hbm [resolvable:$true] %s78_s10 }
   0xd   :  { %56 = dma.hbm_to_vmem [thread:$0]  %s49_s25, 2048, %s51_s28, [#allocation6], %s467_s17, %s467_s17, %s468_s18  }
   0xe   :  { %s472_s0 = smov [#allocation10]  }
   0xf   :  { %s80_s11 = sshll.u32 %s472_s0, 4  ;;  %s81_s11 = int_to_ptr.vmem [resolvable:$true] %s80_s11 }
  0x10   :  { %86 = dma.hbm_to_vmem [thread:$0]  %s79_s10, 2048, %s81_s11, [#allocation9], %s467_s17, %s467_s17, %s468_s18  }
  0x11   :  { %458 = dma.done.wait [#allocation3], 128  }
  0x12   :  { %459 = vsyncadd [#allocation3], 4294967168 }
  0x13   :  { %460 = dma.done.wait [#allocation6], 4096  }
  0x14   :  { %461 = vsyncadd [#allocation6], 4294963200 }
  0x15   :  { %462 = dma.done.wait [#allocation9], 4096  }
  0x16   :  { %463 = vsyncadd [#allocation9], 4294963200  ;;  %v125_v0 = vld [vmem:[#allocation5 + $0x78] sm:$0xff]  ;;  %v124_v1 = vld [vmem:[#allocation5 + $0x70] sm:$0xff]  ;;  %s473_s16 = smov [#allocation11]   ;;  %s288_s20 = sshll.u32 %s563_s9, 4  ;;  %s289_s20 = int_to_ptr.hbm [resolvable:$true] %s288_s20 }
  0x17   :  { %130 = vmatpush.msra.mxu0 %v125_v0  ;;  %v123_v2 = vld [vmem:[#allocation5 + $0x68] sm:$0xff]  ;;  %v122_v3 = vld [vmem:[#allocation5 + $0x60] sm:$0xff]  ;;  %v168_v4 = vld [vmem:[#allocation7 + $0x78] sm:$0xff]  ;;  %s286_s17 = sshll.u32 %s473_s16, 4  ;;  %s287_s17 = int_to_ptr.vmem [resolvable:$true] %s286_s17 }
  0x18   :  { %v121_v5 = vld [vmem:[#allocation5 + $0x58] sm:$0xff]  ;;  %173 = vmatpush.msra.mxu1 %v168_v4  ;;  %v167_v6 = vld [vmem:[#allocation7 + $0x70] sm:$0xff]  ;;  %v166_v7 = vld [vmem:[#allocation7 + $0x68] sm:$0xff] }
  0x19   :  { %131 = vmatpush.msra.mxu0 %v124_v1  ;;  %v120_v8 = vld [vmem:[#allocation5 + $0x50] sm:$0xff]  ;;  %v165_v9 = vld [vmem:[#allocation7 + $0x60] sm:$0xff]  ;;  %v119_v10 = vld [vmem:[#allocation5 + $0x48] sm:$0xff] }
  0x1a   :  { %174 = vmatpush.msra.mxu1 %v167_v6  ;;  %v164_v11 = vld [vmem:[#allocation7 + $0x58] sm:$0xff]  ;;  %v118_v12 = vld [vmem:[#allocation5 + $0x40] sm:$0xff]  ;;  %v163_v13 = vld [vmem:[#allocation7 + $0x50] sm:$0xff] }
  0x1b   :  { %132 = vmatpush.msra.mxu0 %v123_v2  ;;  %v117_v14 = vld [vmem:[#allocation5 + $0x38] sm:$0xff]  ;;  %v162_v15 = vld [vmem:[#allocation7 + $0x48] sm:$0xff]  ;;  %v116_v16 = vld [vmem:[#allocation5 + $0x30] sm:$0xff] }
  0x1c   :  { %175 = vmatpush.msra.mxu1 %v166_v7  ;;  %v161_v17 = vld [vmem:[#allocation7 + $0x40] sm:$0xff]  ;;  %v115_v18 = vld [vmem:[#allocation5 + $0x28] sm:$0xff]  ;;  %v160_v19 = vld [vmem:[#allocation7 + $0x38] sm:$0xff] }
  0x1d   :  { %133 = vmatpush.msra.mxu0 %v122_v3  ;;  %v114_v20 = vld [vmem:[#allocation5 + $0x20] sm:$0xff]  ;;  %v159_v21 = vld [vmem:[#allocation7 + $0x30] sm:$0xff]  ;;  %v113_v22 = vld [vmem:[#allocation5 + $0x18] sm:$0xff] }
  0x1e   :  { %176 = vmatpush.msra.mxu1 %v165_v9  ;;  %v158_v23 = vld [vmem:[#allocation7 + $0x28] sm:$0xff]  ;;  %v112_v24 = vld [vmem:[#allocation5 + $0x10] sm:$0xff]  ;;  %v157_v25 = vld [vmem:[#allocation7 + $0x20] sm:$0xff] }
  0x1f   :  { %134 = vmatpush.msra.mxu0 %v121_v5  ;;  %v111_v26 = vld [vmem:[#allocation5 + $0x8] sm:$0xff]  ;;  %v156_v27 = vld [vmem:[#allocation7 + $0x18] sm:$0xff]  ;;  %v110_v28 = vld [vmem:[#allocation5] sm:$0xff] }
  0x20   :  { %177 = vmatpush.msra.mxu1 %v164_v11  ;;  %v109_v29 = vld [vmem:[#allocation2] sm:$0xff]  ;;  %v155_v30 = vld [vmem:[#allocation7 + $0x10] sm:$0xff]  ;;  %v154_v31 = vld [vmem:[#allocation7 + $0x8] sm:$0xff] }
  0x21   :  { %135 = vmatpush.msra.mxu0 %v120_v8  ;;  %v153_v32 = vld [vmem:[#allocation7] sm:$0xff]  ;;  %v211_v33 = vld [vmem:[#allocation8 + $0x78] sm:$0xff]  ;;  %v210_v34 = vld [vmem:[#allocation8 + $0x70] sm:$0xff] }
  0x22   :  { %178 = vmatpush.msra.mxu1 %v163_v13  ;;  %216 = vmatpush.msra.mxu2 %v211_v33  ;;  %v209_v35 = vld [vmem:[#allocation8 + $0x68] sm:$0xff]  ;;  %v208_v36 = vld [vmem:[#allocation8 + $0x60] sm:$0xff]  ;;  %v207_v37 = vld [vmem:[#allocation8 + $0x58] sm:$0xff] }
  0x23   :  { %136 = vmatpush.msra.mxu0 %v119_v10  ;;  %v206_v38 = vld [vmem:[#allocation8 + $0x50] sm:$0xff]  ;;  %v205_v39 = vld [vmem:[#allocation8 + $0x48] sm:$0xff]  ;;  %v204_v40 = vld [vmem:[#allocation8 + $0x40] sm:$0xff] }
  0x24   :  { %179 = vmatpush.msra.mxu1 %v162_v15  ;;  %217 = vmatpush.msra.mxu2 %v210_v34  ;;  %v203_v41 = vld [vmem:[#allocation8 + $0x38] sm:$0xff]  ;;  %v202_v42 = vld [vmem:[#allocation8 + $0x30] sm:$0xff]  ;;  %v201_v43 = vld [vmem:[#allocation8 + $0x28] sm:$0xff] }
  0x25   :  { %137 = vmatpush.msra.mxu0 %v118_v12  ;;  %v200_v44 = vld [vmem:[#allocation8 + $0x20] sm:$0xff]  ;;  %v199_v45 = vld [vmem:[#allocation8 + $0x18] sm:$0xff]  ;;  %v198_v51 = vld [vmem:[#allocation8 + $0x10] sm:$0xff] }
  0x26   :  { %180 = vmatpush.msra.mxu1 %v161_v17  ;;  %218 = vmatpush.msra.mxu2 %v209_v35  ;;  %v308_v46 = vld [vmem:[%s556_s2] ss:$0 sm:$0xff]  ;;  %v197_v52 = vld [vmem:[#allocation8 + $0x8] sm:$0xff]  ;;  %v196_v53 = vld [vmem:[#allocation8] sm:$0xff] }
  0x27   :  { %138 = vmatpush.msra.mxu0 %v117_v14  ;;  %v254_v54 = vld [vmem:[#allocation10 + $0x78] sm:$0xff]  ;;  %v253_v55 = vld [vmem:[#allocation10 + $0x70] sm:$0xff]  ;;  %v252_v56 = vld [vmem:[#allocation10 + $0x68] sm:$0xff] }
  0x28   :  { %181 = vmatpush.msra.mxu1 %v160_v19  ;;  %219 = vmatpush.msra.mxu2 %v208_v36  ;;  %v251_v57 = vld [vmem:[#allocation10 + $0x60] sm:$0xff]  ;;  %v250_v58 = vld [vmem:[#allocation10 + $0x58] sm:$0xff]  ;;  %v249_v59 = vld [vmem:[#allocation10 + $0x50] sm:$0xff] }
  0x29   :  { %139 = vmatpush.msra.mxu0 %v116_v16  ;;  %259 = vmatpush.msra.mxu3 %v254_v54  ;;  %v248_v60 = vld [vmem:[#allocation10 + $0x48] sm:$0xff]  ;;  %v247_v61 = vld [vmem:[#allocation10 + $0x40] sm:$0xff]  ;;  %v246_v62 = vld [vmem:[#allocation10 + $0x38] sm:$0xff] }
  0x2a   :  { %182 = vmatpush.msra.mxu1 %v159_v21  ;;  %220 = vmatpush.msra.mxu2 %v207_v37  ;;  %v245_v63 = vld [vmem:[#allocation10 + $0x30] sm:$0xff]  ;;  %v244_v0 = vld [vmem:[#allocation10 + $0x28] sm:$0xff]  ;;  %v243_v1 = vld [vmem:[#allocation10 + $0x20] sm:$0xff] }
  0x2b   :  { %140 = vmatpush.msra.mxu0 %v115_v18  ;;  %260 = vmatpush.msra.mxu3 %v253_v55  ;;  %v242_v2 = vld [vmem:[#allocation10 + $0x18] sm:$0xff]  ;;  %v241_v8 = vld [vmem:[#allocation10 + $0x10] sm:$0xff]  ;;  %v240_v9 = vld [vmem:[#allocation10 + $0x8] sm:$0xff] }
  0x2c   :  { %183 = vmatpush.msra.mxu1 %v158_v23  ;;  %221 = vmatpush.msra.mxu2 %v206_v38  ;;  %v309_v3 = vld [vmem:[%s558_s4] ss:$0 sm:$0xff]  ;;  %v239_v10 = vld [vmem:[#allocation10] sm:$0xff] }
  0x2d   :  { %141 = vmatpush.msra.mxu0 %v114_v20  ;;  %261 = vmatpush.msra.mxu3 %v252_v56  ;;  %v310_v11 = vld [vmem:[%s560_s6] ss:$0 sm:$0xff] }
  0x2e   :  { %184 = vmatpush.msra.mxu1 %v157_v25  ;;  %222 = vmatpush.msra.mxu2 %v205_v39  ;;  %v311_v16 = vld [vmem:[%s562_s8] ss:$0 sm:$0xff] }
  0x2f   :  { %142 = vmatpush.msra.mxu0 %v113_v22  ;;  %262 = vmatpush.msra.mxu3 %v251_v57 }
  0x30   :  { %185 = vmatpush.msra.mxu1 %v156_v27  ;;  %223 = vmatpush.msra.mxu2 %v204_v40 }
  0x31   :  { %143 = vmatpush.msra.mxu0 %v112_v24  ;;  %263 = vmatpush.msra.mxu3 %v250_v58 }
  0x32   :  { %186 = vmatpush.msra.mxu1 %v155_v30  ;;  %224 = vmatpush.msra.mxu2 %v203_v41 }
  0x33   :  { %144 = vmatpush.msra.mxu0 %v111_v26  ;;  %264 = vmatpush.msra.mxu3 %v249_v59 }
  0x34   :  { %187 = vmatpush.msra.mxu1 %v154_v31  ;;  %225 = vmatpush.msra.mxu2 %v202_v42 }
  0x35   :  { %145 = vmatpush.msra.mxu0 %v110_v28  ;;  %265 = vmatpush.msra.mxu3 %v248_v60 }
  0x36   :  { %146 = vmatmul.f32.vlgmr.msra.gmra.mxu0 %v109_v29  ;;  %188 = vmatpush.msra.mxu1 %v153_v32 }
  0x37   :  { %226 = vmatpush.msra.mxu2 %v201_v43  ;;  %266 = vmatpush.msra.mxu3 %v247_v61 }
  0x39   :  { %227 = vmatpush.msra.mxu2 %v200_v44  ;;  %267 = vmatpush.msra.mxu3 %v246_v62 }
  0x3b   :  { %228 = vmatpush.msra.mxu2 %v199_v45  ;;  %268 = vmatpush.msra.mxu3 %v245_v63 }
  0x3d   :  { %229 = vmatpush.msra.mxu2 %v198_v51  ;;  %269 = vmatpush.msra.mxu3 %v244_v0 }
  0x3f   :  { %230 = vmatpush.msra.mxu2 %v197_v52  ;;  %270 = vmatpush.msra.mxu3 %v243_v1 }
  0x41   :  { %231 = vmatpush.msra.mxu2 %v196_v53  ;;  %271 = vmatpush.msra.mxu3 %v242_v2 }
  0x43   :  { %272 = vmatpush.msra.mxu3 %v241_v8 }
  0x45   :  { %273 = vmatpush.msra.mxu3 %v240_v9 }
  0x47   :  { %274 = vmatpush.msra.mxu3 %v239_v10 }
  0xb3   :  { %v147_v47 = vpop.f32.mrf.mxu0 }
  0xb4   :  { %v148_v48 = vadd.f32 %v308_v46, %v147_v47 }
  0xb6   :  { %vm150_vm0 = vcmp.gt.f32.partialorder %v148_v48, 0.0  ;;  %v151_v49 = vmul.f32 0.2, %v148_v48 }
  0xb8   :  { %v152_v50 = vsel %vm150_vm0, %v148_v48, %v151_v49 }
  0xb9   :  { %189 = vmatmul.f32.vlgmr.msra.gmra.mxu1 %v152_v50 }
 0x136   :  { %v190_v4 = vpop.f32.mrf.mxu1 }
 0x137   :  { %v191_v5 = vadd.f32 %v309_v3, %v190_v4 }
 0x139   :  { %vm193_vm1 = vcmp.gt.f32.partialorder %v191_v5, 0.0  ;;  %v194_v6 = vmul.f32 0.2, %v191_v5 }
 0x13b   :  { %v195_v7 = vsel %vm193_vm1, %v191_v5, %v194_v6 }
 0x13c   :  { %232 = vmatmul.f32.vlgmr.msra.gmra.mxu2 %v195_v7 }
 0x1bf   :  { %v233_v12 = vpop.f32.mrf.mxu2 }
 0x1c0   :  { %v234_v13 = vadd.f32 %v310_v11, %v233_v12 }
 0x1c2   :  { %vm236_vm2 = vcmp.gt.f32.partialorder %v234_v13, 0.0  ;;  %v237_v14 = vmul.f32 0.2, %v234_v13 }
 0x1c4   :  { %v238_v15 = vsel %vm236_vm2, %v234_v13, %v237_v14 }
 0x1c5   :  { %275 = vmatmul.f32.vlgmr.msra.gmra.mxu3 %v238_v15 }
 0x248   :  { %v276_v17 = vpop.f32.mrf.mxu3 }
 0x249   :  { %v277_v18 = vadd.f32 %v311_v16, %v276_v17 }
 0x24b   :  { %312 = vtanh.f32 %v277_v18 }
 0x251   :  { %v313_v19 = vpop.eup %312 }
 0x252   :  { %280 = vst [vmem:[#allocation11] sm:$0xff] %v313_v19 }
 0x253   :  { %291 = dma.vmem_to_hbm [thread:$0]  %s287_s17, 128, %s289_s20, [#allocation4]  }
 0x254   :  { %464 = dma.done.wait [#allocation4], 128  }
 0x255   :  { %465 = vsyncadd [#allocation4], 4294967168 }
 0x256   :  { %296 = vsyncpa [#allocation3], 1 }
 0x257   :  { %297 = vsyncpa [#allocation6], 1 }
 0x258   :  { %298 = vsyncpa [#allocation9], 1 }
 0x259   :  { %299 = vsyncpa [#allocation4], 1 }

</bundles_post_ra>
